<compile_context>
chip_gen: v5e
topology: v5e:2x2
jax: 0.10.0
libtpu: 0.0.40
codegen_flags: <defaults>
</compile_context>

<pallas_src>
import functools

import jax
import jax.numpy as jnp
from jax.experimental import pallas as pl
from jax.experimental.pallas import tpu as pltpu

NEG_SLOPE = 0.01     # nn.LeakyReLU default negative_slope
LANE = 128
L_MAX = 2048         # target lane-tile length (multiple of 128)


def _cdiv(a, b):
    return -(-a // b)


def _round_up(a, b):
    return _cdiv(a, b) * b


# ------------------------------ geometry / glue ------------------------------


def _flat_geometry(H, W, l_max=L_MAX):
    """Padded-frame flat layout: rows 0..H+1, cols 0..W+1, index n = r*Wp + c."""
    Wp = W + 2
    Np = (H + 2) * Wp
    HL = LANE * _cdiv(Wp + 1, LANE)              # halo length (covers +-(Wp+1))
    max_mult = max(1, l_max // HL)
    L = HL * min(max_mult, _cdiv(Np, HL))        # lane-tile length, multiple of HL
    nt = _cdiv(Np, L)
    Nf = nt * L
    return dict(H=H, W=W, Wp=Wp, Np=Np, HL=HL, L=L, nt=nt, Nf=Nf)


def _to_flat(x_nchw):
    """(B, C, H, W) -> (B, Cpad, Nf) flat padded frame (zero borders / zero channels)."""
    B, C, H, W = x_nchw.shape
    g = _flat_geometry(H, W)
    Cp = _round_up(C, 8)
    xp = jnp.pad(x_nchw, ((0, 0), (0, Cp - C), (1, 1), (1, 1)))
    xf = xp.reshape(B, Cp, g["Np"])
    xf = jnp.pad(xf, ((0, 0), (0, 0), (0, g["Nf"] - g["Np"])))
    g["Cp"] = Cp
    return xf, g


def _flatten_weight(w_oihw, cp):
    """(Cout, Cin, 3, 3) -> (Cout, 9*cp) with K order ((ky*3+kx)*cp + cin)."""
    cout, cin = w_oihw.shape[:2]
    wpad = jnp.pad(w_oihw, ((0, 0), (0, cp - cin), (0, 0), (0, 0)))
    return jnp.transpose(wpad, (0, 2, 3, 1)).reshape(cout, 9 * cp)


def _pool_from_flat(y_flat, g):
    """Extract interior of the padded frame and 2x2 max-pool -> (B, C, H//2, W//2)."""
    # TODO(synk): fuse the 2x2 max-pool into the conv epilogue (needs stride-2
    # lane gather); currently done in XLA glue.
    B, C, _ = y_flat.shape
    H, W, Wp, Np = g["H"], g["W"], g["Wp"], g["Np"]
    assert H % 2 == 0 and W % 2 == 0, "MaxPool2d(2) expects even spatial dims"
    y = y_flat[:, :, :Np].reshape(B, C, H + 2, Wp)[:, :, 1:H + 1, 1:W + 1]
    y = y.reshape(B, C, H // 2, 2, W // 2, 2)
    return jnp.max(jnp.max(y, axis=5), axis=3)


# -------------------------------- Pallas kernels -----------------------------


def _conv_pre(xl_ref, xm_ref, xr_ref, w_ref, b_ref, *, wp, hl, l):
    """3x3 conv + bias pre-activation for one lane tile.  Returns (Cout, l) f32.

    xl/xm/xr: (1, Cpad, hl) / (1, Cpad, l) / (1, Cpad, hl) blocks of the flat
    padded-frame activation (left halo, main tile, right halo).
    w_ref: (Cout, 9*Cpad), b_ref: (Cout, 1).
    """
    x = jnp.concatenate([xl_ref[0], xm_ref[0], xr_ref[0]], axis=1)  # (Cp, hl+l+hl)
    taps = []
    for dy in (-1, 0, 1):
        for dx in (-1, 0, 1):
            d = dy * wp + dx                       # static flat offset of this tap
            taps.append(x[:, hl + d: hl + d + l])  # (Cp, l)
    k = jnp.concatenate(taps, axis=0)              # (9*Cp, l) im2col slab
    acc = jnp.dot(w_ref[...], k, preferred_element_type=jnp.float32)
    return acc + b_ref[...]                        # (Cout, l) f32


def _conv_lrelu_kernel(xl_ref, xm_ref, xr_ref, w_ref, b_ref, o_ref, *, wp, hl, l):
    y = _conv_pre(xl_ref, xm_ref, xr_ref, w_ref, b_ref, wp=wp, hl=hl, l=l)
    y = jnp.where(y > 0, y, NEG_SLOPE * y)         # LeakyReLU
    o_ref[0] = y.astype(o_ref.dtype)


def _conv_relu_gap_kernel(xl_ref, xm_ref, xr_ref, w_ref, b_ref, o_ref,
                          *, wp, hl, l, h, w):
    # conv -> ReLU -> masked partial sum, accumulated over the spatial tiles.
    i = pl.program_id(1)
    y = jnp.maximum(_conv_pre(xl_ref, xm_ref, xr_ref, w_ref, b_ref,
                              wp=wp, hl=hl, l=l), 0.0)          # (Cout, l)
    pos = i * l + jax.lax.broadcasted_iota(jnp.int32, (1, l), 1)
    row = pos // wp
    col = pos - row * wp
    inside = (row >= 1) & (row <= h) & (col >= 1) & (col <= w)
    part = jnp.sum(jnp.where(inside, y, 0.0), axis=1, keepdims=True)   # (Cout, 1)

    @pl.when(i == 0)
    def _():
        o_ref[0] = jnp.zeros_like(o_ref[0])

    o_ref[0] += jnp.broadcast_to(part, o_ref.shape[1:]).astype(o_ref.dtype)

    @pl.when(i == pl.num_programs(1) - 1)
    def _():
        o_ref[0] = o_ref[0] * (1.0 / float(h * w))               # GAP mean


def _scale_kernel(conf_ref, x_ref, o_ref):
    conf = conf_ref[0][:, 0:1]                                   # (3, 1)
    o_ref[0] = (x_ref[0] * conf).astype(o_ref.dtype)


# ------------------------------- pallas wrappers ------------------------------


def _conv_in_specs(g, cp, cout):
    HL, L, Nf = g["HL"], g["L"], g["Nf"]
    r = L // HL
    nhl = Nf // HL
    return [
        pl.BlockSpec((1, cp, HL), lambda bi, i: (bi, 0, jnp.maximum(i * r - 1, 0))),
        pl.BlockSpec((1, cp, L), lambda bi, i: (bi, 0, i)),
        pl.BlockSpec((1, cp, HL), lambda bi, i: (bi, 0, jnp.minimum((i + 1) * r, nhl - 1))),
        pl.BlockSpec((cout, 9 * cp), lambda bi, i: (0, 0)),
        pl.BlockSpec((cout, 1), lambda bi, i: (0, 0)),
    ]


def conv3x3_lrelu(x_nchw, w_oihw, b):
    B, _, H, W = x_nchw.shape
    cout = w_oihw.shape[0]
    xf, g = _to_flat(x_nchw)
    cp = g["Cp"]
    wf = _flatten_weight(w_oihw, cp).astype(jnp.float32)
    bf = b.reshape(cout, 1).astype(jnp.float32)
    kernel = functools.partial(_conv_lrelu_kernel, wp=g["Wp"], hl=g["HL"], l=g["L"])
    out = pl.pallas_call(
        kernel,
        out_shape=jax.ShapeDtypeStruct((B, cout, g["Nf"]), x_nchw.dtype),
        grid_spec=pltpu.PrefetchScalarGridSpec(
            num_scalar_prefetch=0,
            grid=(B, g["nt"]),
            in_specs=_conv_in_specs(g, cp, cout),
            out_specs=pl.BlockSpec((1, cout, g["L"]), lambda bi, i: (bi, 0, i)),
        ),
        compiler_params=pltpu.CompilerParams(
            dimension_semantics=("parallel", "parallel")),
    )(xf, xf, xf, wf, bf)
    return out, g


def conv3x3_relu_gap(x_nchw, w_oihw, b):
    B, _, H, W = x_nchw.shape
    cout = w_oihw.shape[0]
    xf, g = _to_flat(x_nchw)
    cp = g["Cp"]
    wf = _flatten_weight(w_oihw, cp).astype(jnp.float32)
    bf = b.reshape(cout, 1).astype(jnp.float32)
    kernel = functools.partial(_conv_relu_gap_kernel,
                               wp=g["Wp"], hl=g["HL"], l=g["L"], h=H, w=W)
    conf = pl.pallas_call(
        kernel,
        out_shape=jax.ShapeDtypeStruct((B, cout, LANE), jnp.float32),
        grid_spec=pltpu.PrefetchScalarGridSpec(
            num_scalar_prefetch=0,
            grid=(B, g["nt"]),
            in_specs=_conv_in_specs(g, cp, cout),
            out_specs=pl.BlockSpec((1, cout, LANE), lambda bi, i: (bi, 0, 0)),
        ),
        compiler_params=pltpu.CompilerParams(
            dimension_semantics=("parallel", "arbitrary")),
    )(xf, xf, xf, wf, bf)
    return conf                                                   # (B, 3, 128)


def scale_by_conf(conf, rgb_nchw):
    B, C, H, W = rgb_nchw.shape
    hw = H * W
    Lr = LANE * max(1, min(L_MAX // LANE, _cdiv(hw, LANE)))
    nt = _cdiv(hw, Lr)
    hwf = nt * Lr
    rf = jnp.pad(rgb_nchw.reshape(B, C, hw), ((0, 0), (0, 0), (0, hwf - hw)))
    out = pl.pallas_call(
        _scale_kernel,
        out_shape=jax.ShapeDtypeStruct((B, C, hwf), rgb_nchw.dtype),
        grid_spec=pltpu.PrefetchScalarGridSpec(
            num_scalar_prefetch=0,
            grid=(B, nt),
            in_specs=[
                pl.BlockSpec((1, C, LANE), lambda bi, i: (bi, 0, 0)),
                pl.BlockSpec((1, C, Lr), lambda bi, i: (bi, 0, i)),
            ],
            out_specs=pl.BlockSpec((1, C, Lr), lambda bi, i: (bi, 0, i)),
        ),
        compiler_params=pltpu.CompilerParams(
            dimension_semantics=("parallel", "parallel")),
    )(conf, rf)
    return out[:, :, :hw].reshape(B, C, H, W)


# ---------------------------------- GRM forward -------------------------------


def grm_forward(params, all_frames, rgb_x):
    """all_frames: (B, T, 3, H, W); rgb_x: (B, 3, H, W) -> (B, 3, H, W)."""
    B, T, C, H, W = all_frames.shape
    x = jnp.concatenate([all_frames.reshape(B, T * C, H, W), rgb_x], axis=1)
    y, g = conv3x3_lrelu(x, params["w1"], params["b1"])
    x = _pool_from_flat(y, g)
    y, g = conv3x3_lrelu(x, params["w2"], params["b2"])
    x = _pool_from_flat(y, g)
    y, g = conv3x3_lrelu(x, params["w3"], params["b3"])
    x = _pool_from_flat(y, g)
    conf = conv3x3_relu_gap(x, params["w4"], params["b4"])
    return scale_by_conf(conf, rgb_x)
    # TODO(synk): activations/weights could be fed to the MXU as bf16 with f32
    # accumulation for another ~2x bandwidth win on v6e/v7x (kept f32 here to
    # match the f32 reference bit-for-bit within 1e-4).


def init_params(key, frames, n_feat=32):
    cin0 = frames * 3 + 3
    dims = [(cin0, n_feat), (n_feat, n_feat), (n_feat, n_feat), (n_feat, 3)]
    params = {}
    for i, (ci, co) in enumerate(dims, start=1):
        key, kw, kb = jax.random.split(key, 3)
        bound = 1.0 / (ci * 9) ** 0.5
        params[f"w{i}"] = jax.random.uniform(kw, (co, ci, 3, 3), jnp.float32, -bound, bound)
        params[f"b{i}"] = jax.random.uniform(kb, (co,), jnp.float32, -bound, bound)
    return params


# ------------------------------- pure-JAX reference ---------------------------


def grm_reference(params, all_frames, rgb_x):
    B, T, C, H, W = all_frames.shape
    x = jnp.concatenate([all_frames.reshape(B, T * C, H, W), rgb_x], axis=1)

    def conv(z, w, b):
        y = jax.lax.conv_general_dilated(
            z, w, (1, 1), "SAME", dimension_numbers=("NCHW", "OIHW", "NCHW"))
        return y + b.reshape(1, -1, 1, 1)

    def pool(z):
        return jax.lax.reduce_window(z, -jnp.inf, jax.lax.max,
                                     (1, 1, 2, 2), (1, 1, 2, 2), "VALID")

    def lrelu(z):
        return jnp.where(z > 0, z, NEG_SLOPE * z)

    y = pool(lrelu(conv(x, params["w1"], params["b1"])))
    y = pool(lrelu(conv(y, params["w2"], params["b2"])))
    y = pool(lrelu(conv(y, params["w3"], params["b3"])))
    y = jnp.maximum(conv(y, params["w4"], params["b4"]), 0.0)
    conf = jnp.mean(y, axis=(2, 3), keepdims=True)        # (B, 3, 1, 1)
    return conf * rgb_x


if __name__ == "__main__":
    frames, n_feat = 2, 32
    B, H, W = 2, 16, 16

    key = jax.random.PRNGKey(0)
    kp, ka, kr = jax.random.split(key, 3)
    params = init_params(kp, frames, n_feat)
    all_frames = jax.random.normal(ka, (B, frames, 3, H, W), jnp.float32)
    rgb_x = jax.random.normal(kr, (B, 3, H, W), jnp.float32)

    out = jax.block_until_ready(grm_forward(params, all_frames, rgb_x))
    ref = jax.block_until_ready(grm_reference(params, all_frames, rgb_x))

    assert out.shape == (B, 3, H, W), out.shape
    err = float(jnp.max(jnp.abs(out - ref)))
    assert jnp.allclose(out, ref, atol=1e-4, rtol=1e-4), f"max abs err = {err}"
    print("KERNEL_OK")
</pallas_src>

<mosaic_0001>
module attributes {stable_mosaic.version = 11 : i64} {
  func.func @_conv_lrelu_kernel(%arg0: i32, %arg1: i32, %arg2: memref<1x16x128xf32, #tpu.memory_space<vmem>>, %arg3: memref<1x16x384xf32, #tpu.memory_space<vmem>>, %arg4: memref<1x16x128xf32, #tpu.memory_space<vmem>>, %arg5: memref<32x144xf32, #tpu.memory_space<vmem>>, %arg6: memref<32x1xf32, #tpu.memory_space<vmem>>, %arg7: memref<1x32x384xf32, #tpu.memory_space<vmem>>) attributes {dimension_semantics = [#tpu.dimension_semantics<parallel>, #tpu.dimension_semantics<parallel>], iteration_bounds = array<i64: 2, 1>, scalar_prefetch = 0 : i64, scratch_operands = 0 : i64, tpu.core_type = #tpu.core_type<tc>, window_params = [{transform_indices = @transform_0, window_bounds = array<i64: 1, 16, 128>}, {transform_indices = @transform_1, window_bounds = array<i64: 1, 16, 384>}, {transform_indices = @transform_2, window_bounds = array<i64: 1, 16, 128>}, {pipeline_mode = #tpu.pipeline_mode<synchronous>, transform_indices = @transform_3, window_bounds = array<i64: 32, 144>}, {pipeline_mode = #tpu.pipeline_mode<synchronous>, transform_indices = @transform_4, window_bounds = array<i64: 32, 1>}, {transform_indices = @transform_5, window_bounds = array<i64: 1, 32, 384>}]} {
    %c0 = arith.constant 0 : index
    %c0_0 = arith.constant 0 : index
    %c0_1 = arith.constant 0 : index
    %0 = vector.load %arg2[%c0, %c0_0, %c0_1] : memref<1x16x128xf32, #tpu.memory_space<vmem>>, vector<1x16x128xf32>
    %1 = vector.shape_cast %0 : vector<1x16x128xf32> to vector<16x128xf32>
    %c0_2 = arith.constant 0 : index
    %c0_3 = arith.constant 0 : index
    %c0_4 = arith.constant 0 : index
    %2 = vector.load %arg3[%c0_2, %c0_3, %c0_4] : memref<1x16x384xf32, #tpu.memory_space<vmem>>, vector<1x16x384xf32>
    %3 = vector.shape_cast %2 : vector<1x16x384xf32> to vector<16x384xf32>
    %c0_5 = arith.constant 0 : index
    %c0_6 = arith.constant 0 : index
    %c0_7 = arith.constant 0 : index
    %4 = vector.load %arg4[%c0_5, %c0_6, %c0_7] : memref<1x16x128xf32, #tpu.memory_space<vmem>>, vector<1x16x128xf32>
    %5 = vector.shape_cast %4 : vector<1x16x128xf32> to vector<16x128xf32>
    %6 = tpu.concatenate %1, %3, %5 in 1 : vector<16x128xf32>, vector<16x384xf32>, vector<16x128xf32> -> vector<16x640xf32>
    %7 = vector.extract_strided_slice %6 {offsets = [0, 109], sizes = [16, 384], strides = [1, 1]} : vector<16x640xf32> to vector<16x384xf32>
    %8 = vector.extract_strided_slice %6 {offsets = [0, 110], sizes = [16, 384], strides = [1, 1]} : vector<16x640xf32> to vector<16x384xf32>
    %9 = vector.extract_strided_slice %6 {offsets = [0, 111], sizes = [16, 384], strides = [1, 1]} : vector<16x640xf32> to vector<16x384xf32>
    %10 = vector.extract_strided_slice %6 {offsets = [0, 127], sizes = [16, 384], strides = [1, 1]} : vector<16x640xf32> to vector<16x384xf32>
    %11 = vector.extract_strided_slice %6 {offsets = [0, 128], sizes = [16, 384], strides = [1, 1]} : vector<16x640xf32> to vector<16x384xf32>
    %12 = vector.extract_strided_slice %6 {offsets = [0, 129], sizes = [16, 384], strides = [1, 1]} : vector<16x640xf32> to vector<16x384xf32>
    %13 = vector.extract_strided_slice %6 {offsets = [0, 145], sizes = [16, 384], strides = [1, 1]} : vector<16x640xf32> to vector<16x384xf32>
    %14 = vector.extract_strided_slice %6 {offsets = [0, 146], sizes = [16, 384], strides = [1, 1]} : vector<16x640xf32> to vector<16x384xf32>
    %15 = vector.extract_strided_slice %6 {offsets = [0, 147], sizes = [16, 384], strides = [1, 1]} : vector<16x640xf32> to vector<16x384xf32>
    %16 = tpu.concatenate %7, %8, %9, %10, %11, %12, %13, %14, %15 in 0 : vector<16x384xf32>, vector<16x384xf32>, vector<16x384xf32>, vector<16x384xf32>, vector<16x384xf32>, vector<16x384xf32>, vector<16x384xf32>, vector<16x384xf32>, vector<16x384xf32> -> vector<144x384xf32>
    %c0_8 = arith.constant 0 : index
    %c0_9 = arith.constant 0 : index
    %17 = vector.load %arg5[%c0_8, %c0_9] : memref<32x144xf32, #tpu.memory_space<vmem>>, vector<32x144xf32>
    %cst = arith.constant dense<0.000000e+00> : vector<32x384xf32>
    %18 = tpu.matmul %17, %16, %cst {dimension_numbers = #tpu.dot_dimension_numbers<[1], [0], [0], [1], [0, 0, 1, 1], [], []>} : vector<32x144xf32>, vector<144x384xf32>, vector<32x384xf32> -> vector<32x384xf32>
    %c0_10 = arith.constant 0 : index
    %c0_11 = arith.constant 0 : index
    %19 = vector.load %arg6[%c0_10, %c0_11] : memref<32x1xf32, #tpu.memory_space<vmem>>, vector<32x1xf32>
    %20 = vector.broadcast %19 : vector<32x1xf32> to vector<32x384xf32>
    %21 = arith.addf %18, %20 : vector<32x384xf32>
    %cst_12 = arith.constant 0.000000e+00 : f32
    %22 = vector.broadcast %cst_12 : f32 to vector<32x384xf32>
    %23 = arith.cmpf ogt, %21, %22 : vector<32x384xf32>
    %cst_13 = arith.constant 0.00999999977 : f32
    %24 = vector.broadcast %cst_13 : f32 to vector<32x384xf32>
    %25 = arith.mulf %24, %21 : vector<32x384xf32>
    %26 = arith.select %23, %21, %25 : vector<32x384xi1>, vector<32x384xf32>
    %c0_14 = arith.constant 0 : index
    %c0_15 = arith.constant 0 : index
    %c0_16 = arith.constant 0 : index
    %27 = vector.load %arg7[%c0_14, %c0_15, %c0_16] : memref<1x32x384xf32, #tpu.memory_space<vmem>>, vector<1x32x384xf32>
    %28 = vector.shape_cast %27 : vector<1x32x384xf32> to vector<32x384xf32>
    %29 = vector.shape_cast %26 : vector<32x384xf32> to vector<1x32x384xf32>
    tpu.vector_store %arg7[%c0_14, %c0_15, %c0_16], %29 {strides = array<i32>} : memref<1x32x384xf32, #tpu.memory_space<vmem>>, vector<1x32x384xf32>,
    return
  }
  func.func @transform_0(%arg0: i32, %arg1: i32) -> (i32, i32, i32) {
    %c3_i32 = arith.constant 3 : i32
    %0 = arith.muli %arg1, %c3_i32 : i32
    %c1_i32 = arith.constant 1 : i32
    %1 = arith.subi %0, %c1_i32 : i32
    %c0_i32 = arith.constant 0 : i32
    %2 = arith.maxsi %1, %c0_i32 : i32
    %c0_i32_0 = arith.constant 0 : i32
    %c0_i32_1 = arith.constant 0 : i32
    return %arg0, %c0_i32_0, %2 : i32, i32, i32
  }
  func.func @transform_1(%arg0: i32, %arg1: i32) -> (i32, i32, i32) {
    %c0_i32 = arith.constant 0 : i32
    %c0_i32_0 = arith.constant 0 : i32
    return %arg0, %c0_i32, %arg1 : i32, i32, i32
  }
  func.func @transform_2(%arg0: i32, %arg1: i32) -> (i32, i32, i32) {
    %c1_i32 = arith.constant 1 : i32
    %0 = arith.addi %arg1, %c1_i32 : i32
    %c3_i32 = arith.constant 3 : i32
    %1 = arith.muli %0, %c3_i32 : i32
    %c2_i32 = arith.constant 2 : i32
    %2 = arith.minsi %1, %c2_i32 : i32
    %c0_i32 = arith.constant 0 : i32
    %c0_i32_0 = arith.constant 0 : i32
    return %arg0, %c0_i32, %2 : i32, i32, i32
  }
  func.func @transform_3(%arg0: i32, %arg1: i32) -> (i32, i32) {
    %c0_i32 = arith.constant 0 : i32
    %c0_i32_0 = arith.constant 0 : i32
    %c0_i32_1 = arith.constant 0 : i32
    return %c0_i32, %c0_i32_0 : i32, i32
  }
  func.func @transform_4(%arg0: i32, %arg1: i32) -> (i32, i32) {
    %c0_i32 = arith.constant 0 : i32
    %c0_i32_0 = arith.constant 0 : i32
    %c0_i32_1 = arith.constant 0 : i32
    return %c0_i32, %c0_i32_0 : i32, i32
  }
  func.func @transform_5(%arg0: i32, %arg1: i32) -> (i32, i32, i32) {
    %c0_i32 = arith.constant 0 : i32
    %c0_i32_0 = arith.constant 0 : i32
    return %arg0, %c0_i32, %arg1 : i32, i32, i32
  }
}

</mosaic_0001>

<bundles_post_ra>
// kernel: tpu_custom_call.1
= control target key start
LH: loop header
LB: loop body
LE: loop exit
PB: predicated region body
PF: predicated region fallthrough
CT: control target
= control target key end

     0   :  { %s2748_s0 = inlined_call_operand.hbm [shape: f32[2,16,384], index: 0, kind: input, shape index: {}]   ;;  %s2749_s1 = inlined_call_operand.hbm [shape: f32[2,16,384], index: 1, kind: input, shape index: {}]   ;;  %s2750_s2 = inlined_call_operand.hbm [shape: f32[2,16,384], index: 2, kind: input, shape index: {}]   ;;  %s2751_s3 = inlined_call_operand.hbm [shape: f32[32,144], index: 3, kind: input, shape index: {}]   ;;  %s2752_s4 = inlined_call_operand.vmem [shape: f32[32,1], index: 4, kind: input, shape index: {}]   ;;  %s2753_s5 = inlined_call_operand.hbm [shape: f32[2,32,384], index: 5, kind: output, shape index: {}]  }
   0x1   :  { %2771 = sst [smem:[#allocation24_spill]] %s2748_s0 }
   0x2   :  { %2772 = sst [smem:[#allocation25_spill]] %s2749_s1 }
   0x3   :  { %2773 = sst [smem:[#allocation26_spill]] %s2751_s3 }
   0x4   :  { %10 = vsyncpa [#allocation3], 0 }
   0x5   :  { %12 = vsyncpa [#allocation3 + $0x1], 0 }
   0x6   :  { %13 = vsyncpa [#allocation6], 0 }
   0x7   :  { %15 = vsyncpa [#allocation6 + $0x1], 0 }
   0x8   :  { %16 = vsyncpa [#allocation9], 0 }
   0x9   :  { %17 = vsyncpa [#allocation4], 0 }
   0xa   :  { %19 = vsyncpa [#allocation4 + $0x1], 0  ;;  %s2020_s18 = smov 0   ;;  %s2022_s19 = smov 0  }
   0xb   :  { %s2024_s20 = smov 0   ;;  %s2026_s21 = smov 0  }
   0xc   :  { %s2028_s22 = smov 0   ;;  %s2030_s23 = smov 0  }
   0xd LB: > { %2774 = sst [smem:[#allocation15_spill]] %s1957_s20  ;;  %s37_s24 = sadd.s32 1, %s1965_s22  ;;  %s1969_s23 = sphi %s2030_s23, %s25_s23   ;;  %s1965_s22 = sphi %s2028_s22, %s2814_s22   ;;  %s1961_s21 = sphi %s2026_s21, %s2813_s21   ;;  %s1957_s20 = sphi %s2024_s20, %s2812_s20   ;;  %s1953_s19 = sphi %s2022_s19, %s2816_s19   ;;  %s1949_s18 = sphi %s2020_s18, %s2815_s18  }
   0xe   : > { %2775 = sst [smem:[#allocation16_spill]] %s1965_s22  ;;  %s54_s25 = sadd.s32 1, %s1957_s20 }
   0xf   : > { %2776 = sst [smem:[#allocation17_spill]] %s1969_s23  ;;  %p39_p0 = scmp.ge.s32.totalorder %s37_s24, 2 }
  0x10   : > { %p61_p1 = scmp.ne.s32.totalorder %s1957_s20, %s1953_s19  ;;  %p62_p2 = scmp.eq.s32.totalorder %s1969_s23, 0 }
  0x11   : > { %p1285_p3 = scmp.ge.s32.totalorder %s1969_s23, 2  ;;  %s2818_s24 = smov (%p39_p0, %s37_s24), 0 }
  0x12   : > { %2777 = sst [smem:[#allocation18_spill]] %s2818_s24  ;;  %p63_p4 = por %p62_p2, %p61_p1 }
  0x13   : > { %p1350_p5 = scmp.lt.s32.totalorder %s1969_s23, 2  ;;  %s49_s26 = ssub.s32 %s1965_s22, %s2818_s24 }
  0x14   : > { %s2065_s27 = sand.u32 1, %s1957_s20   ;;  %p52_p6 = scmp.eq.s32.totalorder %s49_s26, 0 }
  0x15   : > { %s2068_s28 = smul.u32 48, %s1965_s22  ;;  %p2070_p7 = pnand %p1350_p5, %p63_p4 }
  0x16   : > { %s2075_s30 = scalar_select %p52_p6, %s1957_s20, %s54_s25  }
  0x17   : > { %s269_s6 = sand.u32 1, %s1969_s23   ;;  %s1313_s7 = smul.u32 48, %s2065_s27 }
  0x18   : > { %2779 = sst [smem:[#allocation19_spill]] %s2075_s30  ;;  %s2083_s14 = scalar_lea.sflag [#allocation6], %s269_s6 }
  0x19   : > { %s2780_s1 = sld [smem:[#allocation25_spill]]  ;;  %s273_s12 = scalar_lea.vmem [#allocation5], %s1313_s7 }
  0x1a   : > { %s283_s13 = sshll.u32 %s273_s12, 4  ;;  %s2754_s15 = smov 384   ;;  %s284_s13 = int_to_ptr.vmem [resolvable:$true] %s283_s13 }
  0x1b   : > { %s1972_s16 = smov 24   ;;  %s2091_s17 = sadd.s32 4294967295, %s1969_s23  }
  0x1c   : > { %s1282_s25 = sadd.s32 4294967294, %s1969_s23   ;;  %p67_p8 = scmp.ne.s32.totalorder %s1953_s19, %s1949_s18 }
  0x1d   : > { %p68_p9 = scmp.eq.s32.totalorder %s2091_s17, 0  ;;  %p199_p10 = scmp.eq.s32.totalorder %s2091_s17, 1 }
  0x1e   : > { %p205_p11 = scmp.eq.s32.totalorder %s1282_s25, 1  ;;  %p1283_p13 = scmp.ge.s32.totalorder %s1969_s23, 1 }
  0x1f   : > { %s280_s10 = scalar_lea.hbm %s2780_s1, %s2068_s28  ;;  %p2100_p12 = por %p68_p9, %p67_p8 }
  0x20   : > { %s281_s11 = sshll.u32 %s280_s10, 4  ;;  %p2108_p0 = por %p199_p10, %p61_p1  ;;  %s282_s11 = int_to_ptr.hbm [resolvable:$true] %s281_s11 }
  0x21   : > { %1341 = dma.hbm_to_vmem [thread:$0]  (!%p2070_p7), %s282_s11, 768, %s284_s13, %s2083_s14, %s2754_s15, %s2754_s15, %s1972_s16  }
  0x22   : > { %p2112_p2 = por %p205_p11, %p67_p8  ;;  %p212_p4 = scmp.lt.s32.totalorder %s1969_s23, 3 }
  0x23   : > { %s2785_s3 = sld [smem:[#allocation26_spill]]  ;;  %s1973_s12 = smov [#allocation8]  }
  0x24   : > { %s2783_s7 = scalar_select %p2112_p2, 1, 0 }
  0x25   : > { %p2120_p5 = pnand %p1283_p13, %p212_p4  ;;  %s225_s13 = sshll.u32 %s1973_s12, 4  ;;  %s226_s13 = int_to_ptr.vmem [resolvable:$true] %s225_s13 }
  0x26   : > { %2784 = sst [smem:[#allocation20_spill]] %s2783_s7  ;;  %s1286_s16 = sshll.u32 %s2065_s27, 4 }
  0x27   : > { %p1331_p1 = pneg %p2120_p5  ;;  %s2787_s0 = sld [smem:[#allocation24_spill]] }
  0x28   : > { %s1974_s1 = smov 256   ;;  %s246_s12 = scalar_lea.vmem [#allocation2], %s1286_s16 }
  0x29   : > { %s223_s10 = sshll.u32 %s2785_s3, 4  ;;  %p1332_p6 = pnand %p1331_p1, %p68_p9  ;;  %s224_s10 = int_to_ptr.hbm [resolvable:$true] %s223_s10 }
  0x2a   : > { %s1975_s3 = smov 16   ;;  %s259_s24 = sshll.u32 %s246_s12, 4  ;;  %s260_s24 = int_to_ptr.vmem [resolvable:$true] %s259_s24 }
  0x2b   : > { %1334 = dma.hbm_to_vmem [thread:$0]  (!%p1332_p6), %s224_s10, 1024, %s226_s13, [#allocation9], %s1974_s1, %s1974_s1, %s1975_s3  }
  0x2c   : > { %s243_s22 = scalar_lea.sflag [#allocation3], %s2065_s27  ;;  %s1976_s30 = smov 128  }
  0x2d   : > { %s256_s8 = scalar_lea.hbm %s2787_s0, %s2068_s28  ;;  %s1977_s20 = smov 8  }
  0x2e   : > { %s257_s9 = sshll.u32 %s256_s8, 4  ;;  %s2788_s23 = smov 384   ;;  %s258_s9 = int_to_ptr.hbm [resolvable:$true] %s257_s9 }
  0x2f   : > { %1338 = dma.hbm_to_vmem [thread:$0]  (!%p2070_p7), %s258_s9, 256, %s260_s24, %s243_s22, %s2788_s23, %s1976_s30, %s1977_s20  }
  0x30   : > { %s297_s7 = scalar_lea.vmem [#allocation7], %s1286_s16  ;;  %s1311_s25 = sadd.s32 16, %s2068_s28 }
  0x31   : > { %s310_s15 = sshll.u32 %s297_s7, 4  ;;  %s307_s1 = scalar_lea.hbm %s2750_s2, %s1311_s25  ;;  %s311_s15 = int_to_ptr.vmem [resolvable:$true] %s310_s15 }
  0x32   : > { %s308_s3 = sshll.u32 %s307_s1, 4  ;;  %322 = sbr.rel (%p2120_p5) target bundleno = 633 (0x279), region = 40  ;;  %s309_s3 = int_to_ptr.hbm [resolvable:$true] %s308_s3 }
  0x33   : > { %1344 = dma.hbm_to_vmem [thread:$0]  (!%p2070_p7), %s309_s3, 256, %s311_s15, %s2083_s14, %s2788_s23, %s1976_s30, %s1977_s20  }
  0x37   : > { %s2148_s27 = sand.u32 1, %s1953_s19  }
  0x38   : > { %s1292_s22 = sshll.u32 %s2148_s27, 4  ;;  %s325_s24 = scalar_lea.sflag [#allocation3], %s2148_s27 }
  0x39   : > { %s328_s28 = scalar_lea.vmem [#allocation2], %s1292_s22 }
  0x3a   : > { %1932 = dma.done.wait (%p2100_p12), %s325_s24, 256  }
  0x3b   : > { %1934 = vsyncadd (%p2100_p12), %s325_s24, 4294967040  ;;  %s334_s0 = sand.u32 1, %s2091_s17   ;;  %s1316_s20 = smul.u32 48, %s2148_s27 }
  0x3c   : > { %s335_s23 = scalar_lea.sflag [#allocation6], %s334_s0 }
  0x3d   : > { %s338_s29 = scalar_lea.vmem [#allocation5], %s1316_s20 }
  0x3e   : > { %1936 = dma.done.wait (%p2100_p12), %s335_s23, 1024  }
  0x3f   : > { %1938 = vsyncadd (%p2100_p12), %s335_s23, 4294966272  ;;  %s2162_s30 = scalar_lea.vmem [#allocation7], %s1292_s22 }
  0x40   : > { %1940 = dma.done.wait (%p68_p9), [#allocation9], 1024  }
  0x41   : > { %1942 = vsyncadd (%p68_p9), [#allocation9], 4294966272  ;;  %v2168_v0 = vld [vmem:[%s328_s28 + $0x8] sm:$0xff]  ;;  %v406_v1 = vld [vmem:[%s338_s29 + $0x18] sm:$0xff]  ;;  %s1978_s14 = smov 127   ;;  %s1979_s26 = smov 126  }
  0x42   : > { %2789 = vst [vmem:[#allocation21_spill] sm:$0xff] %v2168_v0  ;;  %v2170_v2 = vld [vmem:[%s328_s28] sm:$0xff]  ;;  %v1431_v3 = vpack.i.bf16 %v406_v1, %v2168_v0  ;;  %v2174_v7 = vld [vmem:[%s338_s29 + $0x28] sm:$0xff]  ;;  %v2176_v9 = vld [vmem:[%s338_s29 + $0x10] sm:$0xff]  ;;  %s1980_s17 = smov 110   ;;  %s1981_s7 = smov 109  }
  0x43   : > { %v403_v4 = vld [vmem:[%s338_s29] sm:$0xff]  ;;  %2790 = vst [vmem:[#allocation22_spill] sm:$0xff] %v2174_v7  ;;  %v404_v8 = vld [vmem:[%s338_s29 + $0x8] sm:$0xff]  ;;  %v1486_v12 = vpack.i.bf16 %v406_v1, %v2176_v9  ;;  %s1982_s10 = smov 108   ;;  %s1983_s11 = smov 92   ;;  %vm458_vm0 = vcmask 1031168  }
  0x44   : > { %v1441_v5 = vpack.i.bf16 %v403_v4, %v2170_v2  ;;  %1432 = vrot.lane.b32.xlu1 %v1431_v3, %s1978_s14  ;;  %v407_v6 = vld [vmem:[%s338_s29 + $0x20] sm:$0xff]  ;;  %v1446_v11 = vpack.i.bf16 %v2176_v9, %v404_v8  ;;  %v2181_v13 = vpack.i.bf16 %v404_v8, %v403_v4  ;;  %v410_v17 = vld [vmem:[%s2162_s30 + $0x8] sm:$0xff]  ;;  %s1984_s13 = smov 91   ;;  %v1551_v19 = vpack.i.bf16 %v403_v4, %v2174_v7  ;;  %s1985_s16 = smov 90  }
  0x45   : > { %v1436_v10 = vpack.i.bf16 %v2174_v7, %v407_v6  ;;  %v409_v14 = vld [vmem:[%s2162_s30] sm:$0xff]  ;;  %v2186_v16 = vpack.i.bf16 %v407_v6, %v406_v1  ;;  %v1511_v18 = vpack.i.bf16 %v410_v17, %v2174_v7  ;;  %vm435_vm1 = vcmask 1039360   ;;  %s1987_s15 = smov 19   ;;  %s1317_s28 = smul.u32 96, %s2148_s27 }
  0x46   : > { %1442 = vrot.lane.b32.xlu2 %v1441_v5, %s1979_s26  ;;  %1422 = vrot.lane.b32.xlu0 %v1441_v5, %s1978_s14  ;;  %v1501_v15 = vpack.i.bf16 %v409_v14, %v2176_v9  ;;  %v1571_v20 = vpack.i.bf16 %v410_v17, %v409_v14  ;;  %v607_v50 = vld [vmem:[%s2752_s4] sm:$0xff]  ;;  %v1986_v52 = vmov 0   ;;  %vm481_vm2 = vcmask 900096   ;;  %s1318_s20 = smul.u32 96, %s1961_s21 }
  0x47   : > { %1576 = vset.pattern.permute.xlu1 %v1986_v52  ;;  %1758 = vset.pattern.permute.xlu0 %v1986_v52  ;;  %vm500_vm3 = vcmask 891904   ;;  %vm592_vm4 = vcmask 736256   ;;  %vm546_vm5 = vcmask 752640   ;;  %vm523_vm6 = vcmask 883712   ;;  %s2691_s0 = scalar_lea.vmem [#allocation10], %s1317_s28 }
  0x48   : > { %1757 = vset.pattern.permute.xlu2 %v1986_v52  ;;  %vm569_vm7 = vcmask 744448   ;;  %vm775_vm8 = vcmask 154624   ;;  %vm884_vm9 = vcmask 130048   ;;  %s1133_s30 = scalar_lea.hbm %s2753_s5, %s1318_s20  ;;  %s1134_s21 = sshll.u32 %s2691_s0, 4  ;;  %s1135_s21 = int_to_ptr.vmem [resolvable:$true] %s1134_s21 }
  0x4c   : > { %1437 = vrot.lane.b32.xlu1 %v1436_v10, %s1978_s14 }
  0x4e   : > { %1447 = vrot.lane.b32.xlu2 %v1446_v11, %s1979_s26  ;;  %1427 = vrot.lane.b32.xlu0 %v1446_v11, %s1978_s14  ;;  %s1136_s14 = sshll.u32 %s1133_s30, 4  ;;  %s1137_s14 = int_to_ptr.hbm [resolvable:$true] %s1136_s14 }
  0x54   : > { %1457 = vrot.lane.b32.xlu1 %v1436_v10, %s1979_s26 }
  0x56   : > { %1462 = vrot.lane.b32.xlu2 %v1441_v5, %s1980_s17  ;;  %1452 = vrot.lane.b32.xlu0 %v1431_v3, %s1979_s26  ;;  %s1120_s26 = scalar_lea.sflag [#allocation4], %s2148_s27 }
  0x5c   : > { %1472 = vrot.lane.b32.xlu1 %v1431_v3, %s1980_s17 }
  0x5e   : > { %1477 = vrot.lane.b32.xlu2 %v1436_v10, %s1980_s17  ;;  %1467 = vrot.lane.b32.xlu0 %v1446_v11, %s1980_s17  ;;  %s1893_s17 = sshra.s32 %s1137_s14, 4  ;;  %s1894_s17 = int_to_ptr.hbm [resolvable:$true] %s1893_s17 }
  0x5f   : > { %p1900_p10 = scmp.lt.s32.totalorder %s1894_s17, %s2753_s5 }
  0x64   : > { %1487 = vrot.lane.b32.xlu1 %v1486_v12, %s1981_s7 }
  0x66   : > { %1492 = vrot.lane.b32.xlu2 %v1436_v10, %s1981_s7  ;;  %1482 = vrot.lane.b32.xlu0 %v2181_v13, %s1981_s7  ;;  %s1895_s7 = scalar_lea.hbm %s1894_s17, 96 }
  0x67   : > { %p1896_p7 = scmp.ne.s32.totalorder %s1894_s17, %s1895_s7 }
  0x69   : > { %p1897_p8 = pnand %p1896_p7, %p2108_p0 }
  0x6b   : > { %p1898_p9 = pneg %p1897_p8 }
  0x6c   : > { %1502 = vrot.lane.b32.xlu1 %v1501_v15, %s1982_s10 }
  0x6e   : > { %1507 = vrot.lane.b32.xlu2 %v2186_v16, %s1982_s10  ;;  %1497 = vrot.lane.b32.xlu0 %v2181_v13, %s1982_s10 }
  0x74   : > { %1517 = vrot.lane.b32.xlu1 %v2181_v13, %s1983_s11 }
  0x76   : > { %1522 = vrot.lane.b32.xlu2 %v1501_v15, %s1983_s11  ;;  %1512 = vrot.lane.b32.xlu0 %v1511_v18, %s1982_s10 }
  0x7c   : > { %1532 = vrot.lane.b32.xlu1 %v1511_v18, %s1983_s11 }
  0x7e   : > { %1537 = vrot.lane.b32.xlu2 %v2181_v13, %s1984_s13  ;;  %1527 = vrot.lane.b32.xlu0 %v2186_v16, %s1983_s11 }
  0x84   : > { %1547 = vrot.lane.b32.xlu1 %v2186_v16, %s1985_s16 }
  0x86   : > { %1552 = vrot.lane.b32.xlu2 %v1551_v19, %s1985_s16  ;;  %1542 = vrot.lane.b32.xlu0 %v1501_v15, %s1984_s13 }
  0x8c   : > { %1562 = vrot.lane.b32.xlu1 %v1511_v18, %s1984_s13 }
  0x8e   : > { %1567 = vrot.lane.b32.xlu2 %v1446_v11, %s1985_s16  ;;  %1557 = vrot.lane.b32.xlu0 %v2186_v16, %s1984_s13  ;;  %s1899_s13 = scalar_lea.hbm %s2753_s5, 192 }
  0x8f   : > { %p1901_p11 = scmp.lt.s32.totalorder %s1899_s13, %s1895_s7 }
  0x91   : > { %p1902_p12 = por %p1901_p11, %p1900_p10 }
  0x93   : > { %p1903_p13 = pnand %p1902_p12, %p1898_p9 }
  0x94   : > { %613 = vperm.xlu1 %1576, %v607_v50  }
  0x96   : > { %1572 = vrot.lane.b32.xlu0 %v1571_v20, %s1985_s16 }
  0xa0   : > { %v1443_v21 = vpop.permute.xlu2 %1442 }
  0xa1   : > { %v1445_v22 = vunpack.i.h.bf16 %v1443_v21  ;;  %v1444_v23 = vunpack.i.l.bf16 %v1443_v21 }
  0xa3   : > { %v459_v25 = vsel %vm458_vm0, %v1444_v23, %v1445_v22 }
  0xa8   : > { %v1448_v24 = vpop.permute.xlu2 %1447 }
  0xa9   : > { %v1450_v26 = vunpack.i.h.bf16 %v1448_v24  ;;  %v1449_v27 = vunpack.i.l.bf16 %v1448_v24 }
  0xab   : > { %v2199_v28 = vpack.i.bf16 %v1450_v26, %v459_v25  ;;  %v2202_v29 = vsel %vm458_vm0, %v1445_v22, %v1449_v27  ;;  %v2205_v30 = vsel %vm458_vm0, %v1449_v27, %v1450_v26 }
  0xb0   : > { %v1463_v32 = vpop.permute.xlu2 %1462 }
  0xb1   : > { %v1465_v10 = vunpack.i.h.bf16 %v1463_v32  ;;  %v1464_v11 = vunpack.i.l.bf16 %v1463_v32 }
  0xb3   : > { %v482_v22 = vsel %vm481_vm2, %v1464_v11, %v1465_v10 }
  0xb6   : > { %v1433_v33 = vpop.permute.xlu1 %1432 }
  0xb7   : > { %v1435_v36 = vunpack.i.h.bf16 %v1433_v33  ;;  %v1434_v37 = vunpack.i.l.bf16 %v1433_v33 }
  0xb8   : > { %v1478_v34 = vpop.permute.xlu2 %1477  ;;  %v2209_v35 = vpop.permute.xlu0 %1422 }
  0xb9   : > { %v2766_v43 = vunpack.i.h.bf16 %v2209_v35  ;;  %v439_v44 = vsel %vm435_vm1, %v1434_v37, %v1435_v36  ;;  %v1480_v4 = vunpack.i.h.bf16 %v1478_v34  ;;  %v1479_v5 = vunpack.i.l.bf16 %v1478_v34 }
  0xbb   : > { %v2259_v19 = vsel %vm481_vm2, %v1479_v5, %v1480_v4 }
  0xbe   : > { %v1438_v38 = vpop.permute.xlu1 %1437 }
  0xbf   : > { %v1440_v39 = vunpack.i.h.bf16 %v1438_v38  ;;  %v1439_v40 = vunpack.i.l.bf16 %v1438_v38 }
  0xc0   : > { %v2211_v41 = vpop.permute.xlu2 %1492  ;;  %v2213_v42 = vpop.permute.xlu0 %1427 }
  0xc1   : > { %v2764_v45 = vunpack.i.h.bf16 %v2213_v42  ;;  %v1429_v46 = vunpack.i.l.bf16 %v2213_v42  ;;  %v2219_v47 = vpack.i.bf16 %v1440_v39, %v439_v44  ;;  %v2222_v48 = vsel %vm435_vm1, %v1435_v36, %v1439_v40 }
  0xc2   : > { %v2225_v49 = vsel %vm435_vm1, %v1439_v40, %v1440_v39  ;;  %v1495_v34 = vunpack.i.h.bf16 %v2211_v41  ;;  %v1494_v36 = vunpack.i.l.bf16 %v2211_v41 }
  0xc3   : > { %2791 = vst [vmem:[#allocation23_spill] sm:$0xff] %v2219_v47  ;;  %v2233_v51 = vsel %vm435_vm1, %v2766_v43, %v1429_v46  ;;  %v2238_v53 = vsel %vm435_vm1, %v1429_v46, %v2764_v45  ;;  %v1424_v43 = vunpack.i.l.bf16 %v2209_v35 }
  0xc4   : > { %v2285_v46 = vsel %vm500_vm3, %v1494_v36, %v1495_v34 }
  0xc6   : > { %v1458_v56 = vpop.permute.xlu1 %1457 }
  0xc7   : > { %v1460_v57 = vunpack.i.h.bf16 %v1458_v56  ;;  %v1459_v58 = vunpack.i.l.bf16 %v1458_v56 }
  0xc8   : > { %v2244_v59 = vpop.permute.xlu2 %1507  ;;  %v1453_v60 = vpop.permute.xlu0 %1452 }
  0xc9   : > { %v1455_v61 = vunpack.i.h.bf16 %v1453_v60  ;;  %v1454_v62 = vunpack.i.l.bf16 %v1453_v60  ;;  %v2247_v63 = vsel %vm458_vm0, %v1459_v58, %v1460_v57 }
  0xcb   : > { %v2250_v1 = vsel %vm458_vm0, %v1455_v61, %v1459_v58  ;;  %v462_v3 = vsel %vm458_vm0, %v1454_v62, %v1455_v61 }
  0xcc   : > { %v2255_v8 = vpack.i.bf16 %v1460_v57, %v462_v3 }
  0xce   : > { %v1473_v12 = vpop.permute.xlu1 %1472 }
  0xcf   : > { %v1475_v14 = vunpack.i.h.bf16 %v1473_v12  ;;  %v1474_v15 = vunpack.i.l.bf16 %v1473_v12 }
  0xd0   : > { %v2257_v17 = vpop.permute.xlu2 %1522  ;;  %v1468_v18 = vpop.permute.xlu0 %1467 }
  0xd1   : > { %v1470_v20 = vunpack.i.h.bf16 %v1468_v18  ;;  %v1469_v21 = vunpack.i.l.bf16 %v1468_v18  ;;  %v485_v23 = vsel %vm481_vm2, %v1474_v15, %v1475_v14  ;;  %v2261_v24 = vsel %vm481_vm2, %v1475_v14, %v1479_v5 }
  0xd2   : > { %v2265_v26 = vpack.i.bf16 %v1480_v4, %v485_v23 }
  0xd3   : > { %v2263_v25 = vpack.i.bf16 %v1470_v20, %v482_v22  ;;  %v2269_v32 = vsel %vm481_vm2, %v1465_v10, %v1469_v21  ;;  %v2271_v33 = vsel %vm481_vm2, %v1469_v21, %v1470_v20 }
  0xd6   : > { %v2277_v38 = vpop.permute.xlu1 %1487 }
  0xd7   : > { %v1490_v39 = vunpack.i.h.bf16 %v2277_v38 }
  0xd8   : > { %v2280_v40 = vpop.permute.xlu2 %1537  ;;  %v2282_v44 = vpop.permute.xlu0 %1482 }
  0xd9   : > { %v2287_v50 = vpack.i.bf16 %v1495_v34, %v1490_v39  ;;  %v2290_v52 = vsel %vm500_vm3, %v1490_v39, %v1494_v36  ;;  %v1510_v36 = vunpack.i.h.bf16 %v2244_v59  ;;  %v2763_v39 = vunpack.i.l.bf16 %v2244_v59 }
  0xda   : > { %v1539_v37 = vunpack.i.l.bf16 %v2280_v40  ;;  %v2768_v6 = vunpack.i.l.bf16 %v2282_v44 }
  0xde   : > { %v2294_v56 = vpop.permute.xlu1 %1502 }
  0xe0   : > { %v2296_v57 = vpop.permute.xlu2 %1552  ;;  %v2298_v58 = vpop.permute.xlu0 %1497 }
  0xe1   : > { %v1555_v60 = vunpack.i.h.bf16 %v2296_v57  ;;  %v1554_v34 = vunpack.i.l.bf16 %v2296_v57 }
  0xe6   : > { %v2301_v61 = vpop.permute.xlu1 %1517 }
  0xe8   : > { %v2303_v62 = vpop.permute.xlu2 %1567  ;;  %v2305_v3 = vpop.permute.xlu0 %1512 }
  0xe9   : > { %v2765_v4 = vunpack.i.h.bf16 %v2303_v62  ;;  %v1569_v5 = vunpack.i.l.bf16 %v2303_v62  ;;  %v2762_v23 = vunpack.i.l.bf16 %v2305_v3  ;;  %v2793_v0 = vunpack.i.h.bf16 %v2303_v62 }
  0xeb   : > { %v593_v10 = vsel %vm592_vm4, %v1555_v60, %v1569_v5  ;;  %v594_v11 = vsel %vm592_vm4, %v1569_v5, %v2765_v4  ;;  %v1520_v4 = vunpack.i.h.bf16 %v2301_v61 }
  0xec   : > { %v1587_v12 = vpack.i.bf16 %v594_v11, %v593_v10 }
  0xee   : > { %1588 = vrot.lane.b32.xlu1 %v1587_v12, %s1987_s15  ;;  %v1533_v14 = vpop.permute.xlu1 %1532 }
  0xef   : > { %v1534_v15 = vunpack.i.l.bf16 %v1533_v14  ;;  %v1535_v27 = vunpack.i.h.bf16 %v1533_v14 }
  0xf0   : > { %v2314_v18 = vpop.permute.xlu0 %1527 }
  0xf1   : > { %v1530_v20 = vunpack.i.h.bf16 %v2314_v18 }
  0xf3   : > { %v551_v21 = vsel %vm546_vm5, %v1530_v20, %v1534_v15 }
  0xf4   : > { %v1602_v22 = vpack.i.bf16 %v1555_v60, %v551_v21  ;;  %v528_v60 = vsel %vm523_vm6, %v1510_v36, %v2762_v23 }
  0xf6   : > { %1603 = vrot.lane.b32.xlu1 %v1602_v22, %s1987_s15  ;;  %v1548_v5 = vpop.permute.xlu1 %1547  ;;  %v527_v22 = vsel %vm523_vm6, %v2763_v39, %v1510_v36  ;;  %v552_v39 = vsel %vm546_vm5, %v1534_v15, %v1535_v27  ;;  %v1519_v27 = vunpack.i.l.bf16 %v2301_v61 }
  0xf7   : > { %v1550_v10 = vunpack.i.h.bf16 %v1548_v5  ;;  %v1549_v11 = vunpack.i.l.bf16 %v1548_v5  ;;  %v1617_v55 = vpack.i.bf16 %v528_v60, %v527_v22  ;;  %v1540_v5 = vunpack.i.h.bf16 %v2280_v40 }
  0xf8   : > { %v2323_v12 = vpop.permute.xlu0 %1542  ;;  %v2770_v22 = vunpack.i.l.bf16 %v2277_v38  ;;  %v1485_v40 = vunpack.i.h.bf16 %v2282_v44  ;;  %v547_v61 = vsel %vm546_vm5, %v1519_v27, %v1520_v4 }
  0xf9   : > { %v596_v21 = vsel %vm592_vm4, %v1549_v11, %v1550_v10  ;;  %v597_v57 = vsel %vm592_vm4, %v1550_v10, %v1554_v34  ;;  %v1544_v54 = vunpack.i.l.bf16 %v2323_v12  ;;  %v1529_v10 = vunpack.i.l.bf16 %v2314_v18 }
  0xfa   : > { %v1577_v31 = vpack.i.bf16 %v597_v57, %v596_v21  ;;  %v1545_v47 = vunpack.i.h.bf16 %v2323_v12  ;;  %v1525_v12 = vunpack.i.h.bf16 %v2257_v17 }
  0xfb   : > { %v571_v36 = vsel %vm569_vm7, %v1540_v5, %v1544_v54  ;;  %v1632_v15 = vpack.i.bf16 %v552_v39, %v1529_v10 }
  0xfc   : > { %1578 = vrot.lane.b32.xlu2 %v1577_v31, %s1987_s15  ;;  %v1524_v31 = vunpack.i.l.bf16 %v2257_v17  ;;  %v572_v62 = vsel %vm569_vm7, %v1544_v54, %v1545_v47  ;;  %v1515_v47 = vunpack.i.h.bf16 %v2305_v3  ;;  %v2798_v17 = vunpack.i.l.bf16 %v2244_v59 }
  0xfd   : > { %v2801_v59 = vpack.i.bf16 %v2238_v53, %v2233_v51  ;;  %v2805_v51 = vpack.i.bf16 %v2205_v30, %v2202_v29  ;;  %v1752_v53 = vpack.i.bf16 %v2176_v9, %v2170_v2  ;;  %v2806_v2 = vld [vmem:[#allocation23_spill] sm:$0xff] }
  0xfe   : > { %1618 = vrot.lane.b32.xlu1 %v1617_v55, %s1987_s15  ;;  %v1563_v23 = vpop.permute.xlu1 %1562  ;;  %v570_v55 = vsel %vm569_vm7, %v1539_v37, %v1540_v5  ;;  %v501_v5 = vsel %vm500_vm3, %v2768_v6, %v1485_v40 }
  0xff   : > { %v1564_v21 = vunpack.i.l.bf16 %v1563_v23  ;;  %v1592_v45 = vpack.i.bf16 %v571_v36, %v570_v55  ;;  %v502_v36 = vsel %vm500_vm3, %v1485_v40, %v2770_v22 }
 0x100   : > { %v1558_v57 = vpop.permute.xlu0 %1557  ;;  %v1647_v55 = vpack.i.bf16 %v502_v36, %v501_v5  ;;  %v1565_v36 = vunpack.i.h.bf16 %v1563_v23 }
 0x101   : > { %v1560_v60 = vunpack.i.h.bf16 %v1558_v57  ;;  %v1559_v14 = vunpack.i.l.bf16 %v1558_v57 }
 0x103   : > { %v573_v18 = vsel %vm569_vm7, %v1559_v14, %v1560_v60  ;;  %v574_v41 = vsel %vm569_vm7, %v1560_v60, %v1564_v21 }
 0x104   : > { %v1582_v57 = vpack.i.bf16 %v574_v41, %v573_v18  ;;  %1593 = vrot.lane.b32.xlu2 %v1592_v45, %s1987_s15  ;;  %v548_v41 = vsel %vm546_vm5, %v1520_v4, %v1524_v31  ;;  %v2792_v18 = vunpack.i.h.bf16 %v2209_v35  ;;  %v1505_v35 = vunpack.i.h.bf16 %v2294_v56 }
 0x105   : > { %v1607_v7 = vpack.i.bf16 %v548_v41, %v547_v61 }
 0x106   : > { %1583 = vrot.lane.b32.xlu0 %v1582_v57, %s1987_s15  ;;  %1633 = vrot.lane.b32.xlu1 %v1632_v15, %s1987_s15  ;;  %v436_v15 = vsel %vm435_vm1, %v1424_v43, %v2792_v18  ;;  %v550_v57 = vsel %vm546_vm5, %v1529_v10, %v1530_v20  ;;  %v1504_v43 = vunpack.i.l.bf16 %v2294_v56  ;;  %v1622_v20 = vpack.i.bf16 %v572_v62, %v1539_v37  ;;  %v2456_v9 = vpop.permute.xlu1 %613 }
 0x107   : > { %v1597_v22 = vpack.i.bf16 %v550_v57, %v1549_v11  ;;  %v1500_v56 = vunpack.i.h.bf16 %v2298_v58  ;;  %v2795_v37 = vpack.i.bf16 %v2285_v46, %v2290_v52  ;;  %v2797_v10 = vunpack.i.l.bf16 %v2305_v3 }
 0x108   : > { %v1573_v60 = vpop.permute.xlu0 %1572  ;;  %v2802_v46 = vunpack.i.l.bf16 %v2282_v44  ;;  %v2803_v52 = vunpack.i.l.bf16 %v2277_v38 }
 0x109   : > { %v1575_v45 = vunpack.i.h.bf16 %v1573_v60  ;;  %v1574_v39 = vunpack.i.l.bf16 %v1573_v60  ;;  %v2794_v60 = vunpack.i.h.bf16 %v2213_v42  ;;  %v575_v42 = vsel %vm569_vm7, %v1564_v21, %v1565_v36 }
 0x10a   : > { %v1612_v11 = vpack.i.bf16 %v575_v42, %v1559_v14  ;;  %v525_v23 = vsel %vm523_vm6, %v1500_v56, %v1504_v43  ;;  %v529_v21 = vsel %vm523_vm6, %v2797_v10, %v1515_v47  ;;  %v549_v14 = vsel %vm546_vm5, %v1524_v31, %v1525_v12 }
 0x10b   : > { %v598_v6 = vsel %vm592_vm4, %v1554_v34, %v1575_v45  ;;  %v595_v40 = vsel %vm592_vm4, %v2793_v0, %v1574_v39  ;;  %v1499_v0 = vunpack.i.l.bf16 %v2298_v58  ;;  %v2796_v58 = vpack.i.bf16 %v2247_v63, %v2250_v1 }
 0x10c   : > { %v1737_v4 = vpack.i.bf16 %v436_v15, %v598_v6  ;;  %v1742_v5 = vpack.i.bf16 %v595_v40, %v2794_v60  ;;  %1608 = vrot.lane.b32.xlu2 %v1607_v7, %s1987_s15  ;;  %v526_v6 = vsel %vm523_vm6, %v1504_v43, %v1505_v35  ;;  %v1642_v61 = vpack.i.bf16 %v549_v14, %v1519_v27 }
 0x10d   : > { %v1662_v34 = vpack.i.bf16 %v526_v6, %v1499_v0  ;;  %v524_v7 = vsel %vm523_vm6, %v1499_v0, %v1500_v56  ;;  %v2799_v63 = vpack.i.bf16 %v2271_v33, %v2269_v32  ;;  %v2800_v1 = vpack.i.bf16 %v2259_v19, %v2261_v24 }
 0x10e   : > { %1598 = vrot.lane.b32.xlu0 %v1597_v22, %s1987_s15  ;;  %1648 = vrot.lane.b32.xlu1 %v1647_v55, %s1987_s15  ;;  %v1627_v54 = vpack.i.bf16 %v525_v23, %v524_v7  ;;  %v1652_v22 = vpack.i.bf16 %v529_v21, %v2798_v17  ;;  %v2804_v19 = vpack.i.bf16 %v2225_v49, %v2222_v48  ;;  %v2808_v49 = vld [vmem:[#allocation22_spill] sm:$0xff] }
 0x114   : > { %1623 = vrot.lane.b32.xlu2 %v1622_v20, %s1987_s15 }
 0x116   : > { %1613 = vrot.lane.b32.xlu0 %v1612_v11, %s1987_s15  ;;  %1663 = vrot.lane.b32.xlu1 %v1662_v34, %s1987_s15 }
 0x11c   : > { %1638 = vrot.lane.b32.xlu2 %v2795_v37, %s1987_s15 }
 0x11e   : > { %1628 = vrot.lane.b32.xlu0 %v1627_v54, %s1987_s15  ;;  %1678 = vrot.lane.b32.xlu1 %v2796_v58, %s1987_s15 }
 0x124   : > { %1653 = vrot.lane.b32.xlu2 %v1652_v22, %s1987_s15 }
 0x126   : > { %1643 = vrot.lane.b32.xlu0 %v1642_v61, %s1987_s15  ;;  %1693 = vrot.lane.b32.xlu1 %v2265_v26, %s1987_s15  ;;  %v1682_v26 = vpack.i.bf16 %v2803_v52, %v2802_v46 }
 0x12c   : > { %1668 = vrot.lane.b32.xlu2 %v2799_v63, %s1987_s15 }
 0x12e   : > { %1658 = vrot.lane.b32.xlu0 %v2800_v1, %s1987_s15  ;;  %1708 = vrot.lane.b32.xlu1 %v2801_v59, %s1987_s15 }
 0x134   : > { %1683 = vrot.lane.b32.xlu2 %v1682_v26, %s1987_s15 }
 0x136   : > { %1673 = vrot.lane.b32.xlu0 %v2287_v50, %s1987_s15  ;;  %1723 = vrot.lane.b32.xlu1 %v2199_v28, %s1987_s15  ;;  %v610_v28 = vld [vmem:[%s2752_s4 + $0x18] sm:$0xff] }
 0x13c   : > { %1698 = vrot.lane.b32.xlu2 %v2804_v19, %s1987_s15 }
 0x13e   : > { %1688 = vrot.lane.b32.xlu0 %v2805_v51, %s1987_s15  ;;  %1738 = vrot.lane.b32.xlu1 %v1737_v4, %s1987_s15 }
 0x144   : > { %1713 = vrot.lane.b32.xlu2 %v2255_v8, %s1987_s15 }
 0x146   : > { %1703 = vrot.lane.b32.xlu0 %v2263_v25, %s1987_s15  ;;  %1753 = vrot.lane.b32.xlu1 %v1752_v53, %s1987_s15 }
 0x14c   : > { %1728 = vrot.lane.b32.xlu2 %v2181_v13, %s1987_s15 }
 0x14e   : > { %1718 = vrot.lane.b32.xlu0 %v2186_v16, %s1987_s15  ;;  %628 = vperm.xlu1 %1576, %v610_v28   ;;  %v2807_v16 = vld [vmem:[#allocation21_spill] sm:$0xff] }
 0x14f   : > { %v1747_v8 = vpack.i.bf16 %v2808_v49, %v2807_v16 }
 0x154   : > { %1743 = vrot.lane.b32.xlu2 %v1742_v5, %s1987_s15 }
 0x156   : > { %1733 = vrot.lane.b32.xlu0 %v2806_v2, %s1987_s15  ;;  %v2458_v29 = vpop.permute.xlu2 %1578 }
 0x157   : > { %v1581_v30 = vunpack.i.h.bf16 %v2458_v29  ;;  %v1580_v48 = vunpack.i.l.bf16 %v2458_v29 }
 0x159   : > { %v828_v13 = vsel %vm775_vm8, %v1580_v48, %v1581_v30 }
 0x15a   : > { %998 = vmatpush.msra.mxu3 %v828_v13 }
 0x15e   : > { %1748 = vrot.lane.b32.xlu0 %v1747_v8, %s1987_s15  ;;  %v1594_v24 = vpop.permute.xlu2 %1593 }
 0x15f   : > { %v1596_v39 = vunpack.i.h.bf16 %v1594_v24  ;;  %v1595_v55 = vunpack.i.l.bf16 %v1594_v24 }
 0x160   : > { %v2468_v25 = vpop.permute.xlu1 %1588 }
 0x161   : > { %v1591_v32 = vunpack.i.h.bf16 %v2468_v25  ;;  %v1590_v33 = vunpack.i.l.bf16 %v2468_v25  ;;  %v819_v40 = vsel %vm775_vm8, %v1595_v55, %v1596_v39 }
 0x163   : > { %v825_v38 = vsel %vm775_vm8, %v1590_v33, %v1591_v32 }
 0x164   : > { %999 = vmatpush.msra.mxu3 %v825_v38 }
 0x166   : > { %v2475_v44 = vpop.permute.xlu2 %1608 }
 0x167   : > { %v1611_v60 = vunpack.i.h.bf16 %v2475_v44  ;;  %v1610_v5 = vunpack.i.l.bf16 %v2475_v44 }
 0x168   : > { %v1604_v50 = vpop.permute.xlu1 %1603 }
 0x169   : > { %v1606_v36 = vunpack.i.h.bf16 %v1604_v50  ;;  %v1605_v0 = vunpack.i.l.bf16 %v1604_v50  ;;  %v813_v7 = vsel %vm775_vm8, %v1610_v5, %v1611_v60 }
 0x16b   : > { %v824_v56 = vsel %vm775_vm8, %v1606_v36, %v1590_v33 }
 0x16e   : > { %v1624_v3 = vpop.permute.xlu2 %1623 }
 0x16f   : > { %v1626_v37 = vunpack.i.h.bf16 %v1624_v3  ;;  %v1625_v58 = vunpack.i.l.bf16 %v1624_v3 }
 0x170   : > { %v2477_v31 = vpop.permute.xlu1 %1618 }
 0x171   : > { %v1621_v42 = vunpack.i.h.bf16 %v2477_v31  ;;  %v1620_v20 = vunpack.i.l.bf16 %v2477_v31  ;;  %v818_v63 = vsel %vm775_vm8, %v1625_v58, %v1595_v55  ;;  %v820_v1 = vsel %vm775_vm8, %v1596_v39, %v1626_v37  ;;  %v2543_v55 = vld [vmem:[#allocation8 + $0x18] sm:$0xff] }
 0x173   : > { %v810_v23 = vsel %vm775_vm8, %v1620_v20, %v1621_v42 }
 0x176   : > { %v2479_v27 = vpop.permute.xlu2 %1638 }
 0x177   : > { %v1641_v51 = vunpack.i.h.bf16 %v2479_v27  ;;  %v1640_v53 = vunpack.i.l.bf16 %v2479_v27 }
 0x178   : > { %v1584_v41 = vpop.permute.xlu0 %1583  ;;  %v1634_v45 = vpop.permute.xlu1 %1633 }
 0x179   : > { %v1586_v18 = vunpack.i.h.bf16 %v1584_v41  ;;  %v1585_v15 = vunpack.i.l.bf16 %v1584_v41  ;;  %v1636_v14 = vunpack.i.h.bf16 %v1634_v45  ;;  %v1635_v61 = vunpack.i.l.bf16 %v1634_v45 }
 0x17a   : > { %v804_v8 = vsel %vm775_vm8, %v1640_v53, %v1641_v51 }
 0x17b   : > { %v822_v57 = vsel %vm775_vm8, %v1585_v15, %v1586_v18  ;;  %v817_v46 = vsel %vm775_vm8, %v1605_v0, %v1636_v14 }
 0x17c   : > { %955 = vmatpush.msra.mxu2 %v822_v57 }
 0x17e   : > { %956 = vmatpush.msra.mxu2 %v819_v40  ;;  %v2483_v4 = vpop.permute.xlu2 %1653 }
 0x17f   : > { %v1656_v3 = vunpack.i.h.bf16 %v2483_v4  ;;  %v1655_v41 = vunpack.i.l.bf16 %v2483_v4 }
 0x180   : > { %v1599_v35 = vpop.permute.xlu0 %1598  ;;  %v2487_v43 = vpop.permute.xlu1 %1648 }
 0x181   : > { %v1601_v62 = vunpack.i.h.bf16 %v1599_v35  ;;  %v1600_v6 = vunpack.i.l.bf16 %v1599_v35  ;;  %v1651_v13 = vunpack.i.h.bf16 %v2487_v43  ;;  %v1650_v16 = vunpack.i.l.bf16 %v2487_v43 }
 0x182   : > { %v809_v4 = vsel %vm775_vm8, %v1655_v41, %v1620_v20  ;;  %v811_v35 = vsel %vm775_vm8, %v1621_v42, %v1656_v3  ;;  %v2569_v20 = vld [vmem:[#allocation8 + $0x28] sm:$0xff] }
 0x183   : > { %v827_v34 = vsel %vm775_vm8, %v1600_v6, %v1580_v48  ;;  %v816_v11 = vsel %vm775_vm8, %v1601_v62, %v1605_v0  ;;  %v815_v59 = vsel %vm775_vm8, %v1635_v61, %v1601_v62  ;;  %v2518_v48 = vld [vmem:[#allocation8 + $0x8] sm:$0xff]  ;;  %v801_v24 = vsel %vm775_vm8, %v1650_v16, %v1651_v13 }
 0x184   : > { %940 = vmatpush.msra.mxu1 %v827_v34  ;;  %957 = vmatpush.msra.mxu2 %v816_v11 }
 0x185   : > { %1299 = vmatmul.msk.f32.vlgmr.msra.gmra.mxu3 %vm884_vm9, %v2518_v48 }
 0x186   : > { %941 = vmatpush.msra.mxu1 %v824_v56  ;;  %958 = vmatpush.msra.mxu2 %v813_v7  ;;  %v2504_v47 = vpop.permute.xlu2 %1668 }
 0x187   : > { %1295 = vmatmul.msk.f32.vlgmr.msra.gmra.mxu1 %vm884_vm9, %v2518_v48  ;;  %v1671_v31 = vunpack.i.h.bf16 %v2504_v47  ;;  %v1670_v62 = vunpack.i.l.bf16 %v2504_v47 }
 0x188   : > { %v1614_v54 = vpop.permute.xlu0 %1613  ;;  %959 = vmatpush.msra.mxu2 %v810_v23  ;;  %v1664_v12 = vpop.permute.xlu1 %1663 }
 0x189   : > { %v1616_v10 = vunpack.i.h.bf16 %v1614_v54  ;;  %v1615_v21 = vunpack.i.l.bf16 %v1614_v54  ;;  %v1666_v57 = vunpack.i.h.bf16 %v1664_v12  ;;  %v1665_v40 = vunpack.i.l.bf16 %v1664_v12 }
 0x18a   : > { %v795_v7 = vsel %vm775_vm8, %v1670_v62, %v1671_v31 }
 0x18b   : > { %v821_v17 = vsel %vm775_vm8, %v1615_v21, %v1585_v15  ;;  %v823_v22 = vsel %vm775_vm8, %v1586_v18, %v1616_v10 }
 0x18c   : > { %897 = vmatpush.msra.mxu0 %v821_v17  ;;  %1013 = vmatpush.msrb.mxu1 %v823_v22  ;;  %v2594_v17 = vld [vmem:[#allocation8 + $0x38] sm:$0xff] }
 0x18d   : > { %1300 = vmatmul.msk.f32.gmra.mxu3 %vm884_vm9, %v2543_v55 }
 0x18e   : > { %898 = vmatpush.msra.mxu0 %v818_v63  ;;  %1014 = vmatpush.msrb.mxu1 %v820_v1  ;;  %v2512_v52 = vpop.permute.xlu2 %1683 }
 0x18f   : > { %1296 = vmatmul.msk.f32.gmra.mxu1 %vm884_vm9, %v2543_v55  ;;  %v1686_v58 = vunpack.i.h.bf16 %v2512_v52  ;;  %v1685_v10 = vunpack.i.l.bf16 %v2512_v52 }
 0x190   : > { %899 = vmatpush.msra.mxu0 %v815_v59  ;;  %1015 = vmatpush.msrb.mxu1 %v817_v46  ;;  %v1629_v26 = vpop.permute.xlu0 %1628  ;;  %v2514_v19 = vpop.permute.xlu1 %1678 }
 0x191   : > { %v1631_v28 = vunpack.i.h.bf16 %v1629_v26  ;;  %v1630_v2 = vunpack.i.l.bf16 %v1629_v26  ;;  %v1681_v34 = vunpack.i.h.bf16 %v2514_v19  ;;  %v1680_v11 = vunpack.i.l.bf16 %v2514_v19 }
 0x192   : > { %v800_v59 = vsel %vm775_vm8, %v1685_v10, %v1650_v16  ;;  %v802_v46 = vsel %vm775_vm8, %v1651_v13, %v1686_v58 }
 0x193   : > { %v807_v49 = vsel %vm775_vm8, %v1630_v2, %v1631_v28  ;;  %v806_v44 = vsel %vm775_vm8, %v1665_v40, %v1630_v2  ;;  %v792_v23 = vsel %vm775_vm8, %v1680_v11, %v1681_v34 }
 0x194   : > { %960 = vmatpush.msra.mxu2 %v807_v49 }
 0x195   : > { %1301 = vmatmul.msk.f32.gmra.mxu3 %vm884_vm9, %v2569_v20 }
 0x196   : > { %961 = vmatpush.msra.mxu2 %v804_v8  ;;  %v2537_v33 = vpop.permute.xlu2 %1698 }
 0x197   : > { %1297 = vmatmul.msk.f32.gmra.mxu1 %vm884_vm9, %v2569_v20 }
 0x198   : > { %v1644_v38 = vpop.permute.xlu0 %1643  ;;  %962 = vmatpush.msra.mxu2 %v801_v24  ;;  %v2539_v50 = vpop.permute.xlu1 %1693 }
 0x199   : > { %v1646_v45 = vunpack.i.h.bf16 %v1644_v38  ;;  %v1645_v39 = vunpack.i.l.bf16 %v1644_v38  ;;  %v1696_v63 = vunpack.i.h.bf16 %v2539_v50  ;;  %v1695_v1 = vunpack.i.l.bf16 %v2539_v50 }
 0x19b   : > { %v812_v18 = vsel %vm775_vm8, %v1645_v39, %v1610_v5  ;;  %v814_v15 = vsel %vm775_vm8, %v1611_v60, %v1646_v45  ;;  %v808_v60 = vsel %vm775_vm8, %v1631_v28, %v1666_v57 }
 0x19c   : > { %900 = vmatpush.msra.mxu0 %v812_v18  ;;  %1016 = vmatpush.msrb.mxu1 %v814_v15 }
 0x19d   : > { %1302 = vmatmul.msk.f32.gmra.mxu3 %vm884_vm9, %v2594_v17 }
 0x19e   : > { %901 = vmatpush.msra.mxu0 %v809_v4  ;;  %1017 = vmatpush.msrb.mxu1 %v811_v35  ;;  %v2563_v5 = vpop.permute.xlu2 %1713 }
 0x19f   : > { %1298 = vmatmul.msk.f32.gmra.mxu1 %vm884_vm9, %v2594_v17  ;;  %v1715_v39 = vunpack.i.l.bf16 %v2563_v5 }
 0x1a0   : > { %v1659_v36 = vpop.permute.xlu0 %1658  ;;  %902 = vmatpush.msra.mxu0 %v806_v44  ;;  %1018 = vmatpush.msrb.mxu1 %v808_v60  ;;  %v2565_v0 = vpop.permute.xlu1 %1708 }
 0x1a1   : > { %v1661_v6 = vunpack.i.h.bf16 %v1659_v36  ;;  %v1660_v42 = vunpack.i.l.bf16 %v1659_v36  ;;  %v1711_v8 = vunpack.i.h.bf16 %v2565_v0  ;;  %v1710_v24 = vunpack.i.l.bf16 %v2565_v0 }
 0x1a2   : > { %v791_v40 = vsel %vm775_vm8, %v1715_v39, %v1680_v11 }
 0x1a3   : > { %v798_v56 = vsel %vm775_vm8, %v1660_v42, %v1661_v6  ;;  %v797_v27 = vsel %vm775_vm8, %v1695_v1, %v1660_v42  ;;  %v799_v52 = vsel %vm775_vm8, %v1661_v6, %v1696_v63  ;;  %v783_v45 = vsel %vm775_vm8, %v1710_v24, %v1711_v8  ;;  %v603_v1 = vld [vmem:[#allocation8 + $0x20] sm:$0xff] }
 0x1a4   : > { %963 = vmatpush.msra.mxu2 %v798_v56 }
 0x1a6   : > { %964 = vmatpush.msra.mxu2 %v795_v7  ;;  %v2588_v54 = vpop.permute.xlu2 %1728 }
 0x1a7   : > { %v1731_v47 = vunpack.i.h.bf16 %v2588_v54  ;;  %v1730_v35 = vunpack.i.l.bf16 %v2588_v54 }
 0x1a8   : > { %v1674_v12 = vpop.permute.xlu0 %1673  ;;  %965 = vmatpush.msra.mxu2 %v792_v23  ;;  %v2590_v37 = vpop.permute.xlu1 %1723 }
 0x1a9   : > { %v1676_v21 = vunpack.i.h.bf16 %v1674_v12  ;;  %v1675_v14 = vunpack.i.l.bf16 %v1674_v12  ;;  %v1725_v57 = vunpack.i.l.bf16 %v2590_v37 }
 0x1ab   : > { %v803_v22 = vsel %vm775_vm8, %v1675_v14, %v1640_v53  ;;  %v805_v61 = vsel %vm775_vm8, %v1641_v51, %v1676_v21  ;;  %v1701_v51 = vunpack.i.h.bf16 %v2537_v33  ;;  %v1700_v53 = vunpack.i.l.bf16 %v2537_v33  ;;  %v608_v33 = vld [vmem:[%s2752_s4 + $0x8] sm:$0xff] }
 0x1ac   : > { %903 = vmatpush.msra.mxu0 %v803_v22  ;;  %1019 = vmatpush.msrb.mxu1 %v805_v61 }
 0x1ad   : > { %v786_v3 = vsel %vm775_vm8, %v1700_v53, %v1701_v51  ;;  %618 = vperm.xlu2 %1757, %v608_v33  }
 0x1ae   : > { %904 = vmatpush.msra.mxu0 %v800_v59  ;;  %1020 = vmatpush.msrb.mxu1 %v802_v46  ;;  %v2616_v26 = vpop.permute.xlu2 %1743  ;;  %v605_v46 = vld [vmem:[#allocation8 + $0x30] sm:$0xff] }
 0x1af   : > { %v1746_v16 = vunpack.i.h.bf16 %v2616_v26  ;;  %v1745_v42 = vunpack.i.l.bf16 %v2616_v26 }
 0x1b0   : > { %v1689_v28 = vpop.permute.xlu0 %1688  ;;  %905 = vmatpush.msra.mxu0 %v797_v27  ;;  %1021 = vmatpush.msrb.mxu1 %v799_v52  ;;  %v2620_v43 = vpop.permute.xlu1 %1738 }
 0x1b1   : > { %v1691_v2 = vunpack.i.h.bf16 %v1689_v28  ;;  %v1690_v13 = vunpack.i.l.bf16 %v1689_v28  ;;  %v1740_v49 = vunpack.i.l.bf16 %v2620_v43  ;;  %v826_v41 = vsel %vm775_vm8, %v1591_v32, %v1746_v16 }
 0x1b2   : > { %v784_v12 = vsel %vm775_vm8, %v1711_v8, %v1745_v42 }
 0x1b3   : > { %v789_v38 = vsel %vm775_vm8, %v1690_v13, %v1691_v2  ;;  %v829_v50 = vsel %vm775_vm8, %v1581_v30, %v1740_v49  ;;  %v1716_v30 = vunpack.i.h.bf16 %v2563_v5  ;;  %v788_v44 = vsel %vm775_vm8, %v1725_v57, %v1690_v13 }
 0x1b4   : > { %966 = vmatpush.msra.mxu2 %v789_v38  ;;  %1056 = vmatpush.msrb.mxu3 %v829_v50 }
 0x1b5   : > { %v793_v4 = vsel %vm775_vm8, %v1681_v34, %v1716_v30  ;;  %v1741_v34 = vunpack.i.h.bf16 %v2620_v43 }
 0x1b6   : > { %967 = vmatpush.msra.mxu2 %v786_v3  ;;  %1057 = vmatpush.msrb.mxu3 %v826_v41 }
 0x1b7   : > { %1303 = vmatmul.msk.f32.vlgmr.msrb.gmra.mxu3 %vm884_vm9, %v2518_v48  ;;  %v1726_v48 = vunpack.i.h.bf16 %v2590_v37  ;;  %v782_v54 = vsel %vm775_vm8, %v1741_v34, %v1710_v24 }
 0x1b8   : > { %v1704_v29 = vpop.permute.xlu0 %1703  ;;  %968 = vmatpush.msra.mxu2 %v783_v45  ;;  %v1754_v37 = vpop.permute.xlu1 %1753 }
 0x1b9   : > { %v1706_v18 = vunpack.i.h.bf16 %v1704_v29  ;;  %v1705_v15 = vunpack.i.l.bf16 %v1704_v29  ;;  %v790_v60 = vsel %vm775_vm8, %v1691_v2, %v1726_v48  ;;  %v1756_v10 = vunpack.i.h.bf16 %v1754_v37 }
 0x1ba   : > { %v1755_v21 = vunpack.i.l.bf16 %v1754_v37 }
 0x1bb   : > { %v794_v25 = vsel %vm775_vm8, %v1705_v15, %v1670_v62  ;;  %v796_v32 = vsel %vm775_vm8, %v1671_v31, %v1706_v18  ;;  %v777_v31 = vsel %vm775_vm8, %v1730_v35, %v1731_v47  ;;  %v599_v62 = vld [vmem:[#allocation8] sm:$0xff]  ;;  %v778_v59 = vsel %vm775_vm8, %v1731_v47, %v1756_v10 }
 0x1bc   : > { %906 = vmatpush.msra.mxu0 %v794_v25  ;;  %1022 = vmatpush.msrb.mxu1 %v796_v32 }
 0x1be   : > { %907 = vmatpush.msra.mxu0 %v791_v40  ;;  %1023 = vmatpush.msrb.mxu1 %v793_v4 }
 0x1bf   : > { %1304 = vmatmul.msk.f32.gmra.mxu3 %vm884_vm9, %v2543_v55  ;;  %v609_v55 = vld [vmem:[%s2752_s4 + $0x10] sm:$0xff] }
 0x1c0   : > { %v1719_v5 = vpop.permute.xlu0 %1718  ;;  %908 = vmatpush.msra.mxu0 %v788_v44  ;;  %1024 = vmatpush.msrb.mxu1 %v790_v60 }
 0x1c1   : > { %v1721_v36 = vunpack.i.h.bf16 %v1719_v5  ;;  %v1720_v19 = vunpack.i.l.bf16 %v1719_v5  ;;  %623 = vperm.xlu0 %1758, %v609_v55  }
 0x1c3   : > { %v780_v0 = vsel %vm775_vm8, %v1720_v19, %v1721_v36 }
 0x1c4   : > { %969 = vmatpush.msra.mxu2 %v780_v0 }
 0x1c6   : > { %970 = vmatpush.msra.mxu2 %v777_v31 }
 0x1c7   : > { %971 = vmatmul.f32.vlgmr.msra.gmra.mxu2 %v599_v62  ;;  %1305 = vmatmul.msk.f32.gmra.mxu3 %vm884_vm9, %v2569_v20  ;;  %v601_v20 = vld [vmem:[#allocation8 + $0x10] sm:$0xff] }
 0x1c8   : > { %v1734_v6 = vpop.permute.xlu0 %1733 }
 0x1c9   : > { %v1736_v11 = vunpack.i.h.bf16 %v1734_v6  ;;  %v1735_v56 = vunpack.i.l.bf16 %v1734_v6 }
 0x1cb   : > { %v785_v7 = vsel %vm775_vm8, %v1735_v56, %v1700_v53  ;;  %v787_v23 = vsel %vm775_vm8, %v1701_v51, %v1736_v11  ;;  %v629_v11 = vpop.permute.xlu1 %628 }
 0x1cc   : > { %909 = vmatpush.msra.mxu0 %v785_v7  ;;  %1025 = vmatpush.msrb.mxu1 %v787_v23 }
 0x1ce   : > { %910 = vmatpush.msra.mxu0 %v782_v54  ;;  %1026 = vmatpush.msrb.mxu1 %v784_v12 }
 0x1cf   : > { %974 = vmatmul.f32.gmra.mxu2 %v601_v20  ;;  %1306 = vmatmul.msk.f32.gmra.mxu3 %vm884_vm9, %v2594_v17  ;;  %v776_v17 = vsel %vm775_vm8, %v1755_v21, %v1730_v35 }
 0x1d0   : > { %v1749_v58 = vpop.permute.xlu0 %1748 }
 0x1d1   : > { %v1751_v14 = vunpack.i.h.bf16 %v1749_v58  ;;  %v1750_v22 = vunpack.i.l.bf16 %v1749_v58 }
 0x1d3   : > { %v779_v61 = vsel %vm775_vm8, %v1750_v22, %v1720_v19  ;;  %v781_v63 = vsel %vm775_vm8, %v1721_v36, %v1751_v14 }
 0x1d4   : > { %911 = vmatpush.msra.mxu0 %v779_v61  ;;  %1027 = vmatpush.msrb.mxu1 %v781_v63 }
 0x1d6   : > { %912 = vmatpush.msra.mxu0 %v776_v17  ;;  %1028 = vmatpush.msrb.mxu1 %v778_v59 }
 0x1d7   : > { %913 = vmatmul.f32.vlgmr.msra.gmra.mxu0 %v599_v62  ;;  %977 = vmatmul.f32.gmra.mxu2 %v603_v1 }
 0x1d8   : > { %1029 = vmatmul.f32.vlgmr.msrb.gmra.mxu1 %v599_v62 }
 0x1df   : > { %916 = vmatmul.f32.gmra.mxu0 %v601_v20  ;;  %980 = vmatmul.f32.gmra.mxu2 %v605_v46 }
 0x1e0   : > { %1032 = vmatmul.f32.gmra.mxu1 %v601_v20 }
 0x1e7   : > { %919 = vmatmul.f32.gmra.mxu0 %v603_v1 }
 0x1e8   : > { %1035 = vmatmul.f32.gmra.mxu1 %v603_v1 }
 0x1ef   : > { %922 = vmatmul.f32.gmra.mxu0 %v605_v46 }
 0x1f0   : > { %1038 = vmatmul.f32.gmra.mxu1 %v605_v46 }
 0x204   : > { %v943_v52 = vpop.f32.mrf.mxu1 }
 0x207   : > { %v619_v38 = vpop.permute.xlu2 %618 }
 0x208   : > { %v1001_v27 = vpop.f32.mrf.mxu3 }
 0x20c   : > { %v946_v51 = vpop.f32.mrf.mxu1 }
 0x210   : > { %v1004_v26 = vpop.f32.mrf.mxu3 }
 0x214   : > { %v2685_v28 = vpop.f32.mrf.mxu1 }
 0x218   : > { %v1007_v53 = vpop.f32.mrf.mxu3 }
 0x21c   : > { %v2689_v16 = vpop.f32.mrf.mxu1 }
 0x220   : > { %v1010_v43 = vpop.f32.mrf.mxu3 }
 0x233   : > { %v624_v48 = vpop.permute.xlu0 %623 }
 0x23a   : > { %v1059_v24 = vpop.f32.mrf.mxu3 }
 0x242   : > { %v1062_v4 = vpop.f32.mrf.mxu3 }
 0x24a   : > { %v972_v2 = vpop.f32.mrf.mxu2  ;;  %v1065_v54 = vpop.f32.mrf.mxu3 }
 0x24b   : > { %v973_v13 = vadd.f32 %v972_v2, %v2456_v9 }
 0x24d   : > { %v1002_v49 = vadd.f32 %v1001_v27, %v973_v13 }
 0x24f   : > { %vm1072_vm10 = vcmp.gt.f32.partialorder %v1002_v49, 0.0  ;;  %v1084_v8 = vmul.f32 0.01, %v1002_v49 }
 0x251   : > { %v1096_v50 = vsel %vm1072_vm10, %v1002_v49, %v1084_v8 }
 0x252   : > { %1108 = vst [vmem:[%s2691_s0 + $0x8] sm:$0xff] %v1096_v50  ;;  %v975_v3 = vpop.f32.mrf.mxu2 }
 0x253   : > { %v976_v41 = vadd.f32 %v975_v3, %v619_v38 }
 0x254   : > { %v914_v45 = vpop.f32.mrf.mxu0 }
 0x255   : > { %v1005_v29 = vadd.f32 %v1004_v26, %v976_v41  ;;  %v915_v30 = vadd.f32 %v914_v45, %v2456_v9  ;;  %v1030_v39 = vpop.f32.mrf.mxu1 }
 0x256   : > { %v1031_v18 = vadd.f32 %v1030_v39, %v2456_v9 }
 0x257   : > { %vm1075_vm11 = vcmp.gt.f32.partialorder %v1005_v29, 0.0  ;;  %v1087_v15 = vmul.f32 0.01, %v1005_v29  ;;  %v944_v25 = vadd.f32 %v943_v52, %v915_v30 }
 0x258   : > { %v1060_v32 = vadd.f32 %v1059_v24, %v1031_v18 }
 0x259   : > { %v1099_v57 = vsel %vm1075_vm11, %v1005_v29, %v1087_v15  ;;  %vm1071_vm12 = vcmp.gt.f32.partialorder %v944_v25, 0.0  ;;  %v1083_v40 = vmul.f32 0.01, %v944_v25 }
 0x25a   : > { %1111 = vst [vmem:[%s2691_s0 + $0x20] sm:$0xff] %v1099_v57  ;;  %vm1073_vm13 = vcmp.gt.f32.partialorder %v1060_v32, 0.0  ;;  %v1085_v47 = vmul.f32 0.01, %v1060_v32  ;;  %v978_v35 = vpop.f32.mrf.mxu2 }
 0x25b   : > { %v1095_v44 = vsel %vm1071_vm12, %v944_v25, %v1083_v40  ;;  %v979_v60 = vadd.f32 %v978_v35, %v624_v48 }
 0x25c   : > { %1107 = vst [vmem:[%s2691_s0] sm:$0xff] %v1095_v44  ;;  %v1097_v9 = vsel %vm1073_vm13, %v1060_v32, %v1085_v47  ;;  %v917_v5 = vpop.f32.mrf.mxu0 }
 0x25d   : > { %1109 = vst [vmem:[%s2691_s0 + $0x10] sm:$0xff] %v1097_v9  ;;  %v1008_v36 = vadd.f32 %v1007_v53, %v979_v60  ;;  %v918_v19 = vadd.f32 %v917_v5, %v619_v38  ;;  %v1033_v0 = vpop.f32.mrf.mxu1 }
 0x25e   : > { %v1034_v31 = vadd.f32 %v1033_v0, %v619_v38 }
 0x25f   : > { %vm1078_vm14 = vcmp.gt.f32.partialorder %v1008_v36, 0.0  ;;  %v1090_v62 = vmul.f32 0.01, %v1008_v36  ;;  %v947_v6 = vadd.f32 %v946_v51, %v918_v19  ;;  %v1068_v51 = vpop.f32.mrf.mxu3 }
 0x260   : > { %v1063_v55 = vadd.f32 %v1062_v4, %v1034_v31 }
 0x261   : > { %v1102_v42 = vsel %vm1078_vm14, %v1008_v36, %v1090_v62  ;;  %vm1074_vm15 = vcmp.gt.f32.partialorder %v947_v6, 0.0  ;;  %v1086_v34 = vmul.f32 0.01, %v947_v6 }
 0x262   : > { %1114 = vst [vmem:[%s2691_s0 + $0x38] sm:$0xff] %v1102_v42  ;;  %vm1076_vm0 = vcmp.gt.f32.partialorder %v1063_v55, 0.0  ;;  %v1088_v56 = vmul.f32 0.01, %v1063_v55  ;;  %v981_v7 = vpop.f32.mrf.mxu2 }
 0x263   : > { %v1098_v23 = vsel %vm1074_vm15, %v947_v6, %v1086_v34  ;;  %v982_v20 = vadd.f32 %v981_v7, %v629_v11 }
 0x264   : > { %1110 = vst [vmem:[%s2691_s0 + $0x18] sm:$0xff] %v1098_v23  ;;  %v1100_v12 = vsel %vm1076_vm0, %v1063_v55, %v1088_v56  ;;  %v920_v37 = vpop.f32.mrf.mxu0 }
 0x265   : > { %1112 = vst [vmem:[%s2691_s0 + $0x28] sm:$0xff] %v1100_v12  ;;  %v1011_v58 = vadd.f32 %v1010_v43, %v982_v20  ;;  %v921_v33 = vadd.f32 %v920_v37, %v624_v48  ;;  %v1036_v10 = vpop.f32.mrf.mxu1 }
 0x266   : > { %v1037_v21 = vadd.f32 %v1036_v10, %v624_v48 }
 0x267   : > { %vm1081_vm1 = vcmp.gt.f32.partialorder %v1011_v58, 0.0  ;;  %v1093_v14 = vmul.f32 0.01, %v1011_v58  ;;  %v950_v22 = vadd.f32 %v2685_v28, %v921_v33 }
 0x268   : > { %v1066_v61 = vadd.f32 %v1065_v54, %v1037_v21 }
 0x269   : > { %v1105_v63 = vsel %vm1081_vm1, %v1011_v58, %v1093_v14  ;;  %vm1077_vm2 = vcmp.gt.f32.partialorder %v950_v22, 0.0  ;;  %v1089_v1 = vmul.f32 0.01, %v950_v22 }
 0x26a   : > { %1117 = vst [vmem:[%s2691_s0 + $0x50] sm:$0xff] %v1105_v63  ;;  %vm1079_vm3 = vcmp.gt.f32.partialorder %v1066_v61, 0.0  ;;  %v1091_v17 = vmul.f32 0.01, %v1066_v61 }
 0x26b   : > { %v1101_v59 = vsel %vm1077_vm2, %v950_v22, %v1089_v1 }
 0x26c   : > { %1113 = vst [vmem:[%s2691_s0 + $0x30] sm:$0xff] %v1101_v59  ;;  %v1103_v46 = vsel %vm1079_vm3, %v1066_v61, %v1091_v17  ;;  %v923_v27 = vpop.f32.mrf.mxu0 }
 0x26d   : > { %1115 = vst [vmem:[%s2691_s0 + $0x40] sm:$0xff] %v1103_v46  ;;  %v924_v52 = vadd.f32 %v923_v27, %v629_v11  ;;  %v1039_v26 = vpop.f32.mrf.mxu1 }
 0x26e   : > { %v1040_v53 = vadd.f32 %v1039_v26, %v629_v11 }
 0x26f   : > { %v953_v28 = vadd.f32 %v2689_v16, %v924_v52 }
 0x270   : > { %v1069_v43 = vadd.f32 %v1068_v51, %v1040_v53 }
 0x271   : > { %vm1080_vm4 = vcmp.gt.f32.partialorder %v953_v28, 0.0  ;;  %v1092_v2 = vmul.f32 0.01, %v953_v28 }
 0x272   : > { %vm1082_vm5 = vcmp.gt.f32.partialorder %v1069_v43, 0.0  ;;  %v1094_v13 = vmul.f32 0.01, %v1069_v43 }
 0x273   : > { %v1104_v49 = vsel %vm1080_vm4, %v953_v28, %v1092_v2 }
 0x274   : > { %1116 = vst [vmem:[%s2691_s0 + $0x48] sm:$0xff] %v1104_v49  ;;  %v1106_v8 = vsel %vm1082_vm5, %v1069_v43, %v1094_v13 }
 0x275   : > { %1118 = vst [vmem:[%s2691_s0 + $0x58] sm:$0xff] %v1106_v8 }
 0x276   : > { %1906 = shalt.err (!%p1903_p13)
}
 0x277   : > { %s1988_s27 = smov 384   ;;  %s1989_s12 = smov 24  }
 0x278   : > { %1329 = dma.vmem_to_hbm [thread:$0]  (%p2108_p0), %s1135_s21, 1536, %s1137_s14, %s1120_s26, %s1988_s27, %s1988_s27, %s1989_s12  }
 0x279 PF: > { %s2810_s25 = sld [smem:[#allocation17_spill]]  ;;  %s1151_s8 = sand.u32 1, %s1949_s18  }
 0x27a   : > { %p1346_p4 = pnand %p1285_p3, %p2112_p2  ;;  %s1152_s1 = scalar_lea.sflag [#allocation4], %s1151_s8 }
 0x27c   : > { %p1347_p5 = pneg %p1346_p4 }
 0x27e   : > { %1944 = dma.done.wait (%p1347_p5), %s1152_s1, 1536  }
 0x27f   : > { %1946 = vsyncadd (%p1347_p5), %s1152_s1, 4294965760  ;;  %s25_s23 = sadd.s32 1, %s2810_s25   ;;  %s2811_s3 = sld [smem:[#allocation15_spill]] }
 0x280   : > { %p22_p1 = scmp.ge.s32.totalorder %s25_s23, 4   ;;  %s2812_s20 = sld [smem:[#allocation19_spill]] }
 0x281   : > { %s2813_s21 = sld [smem:[#allocation16_spill]]  ;;  %s2815_s18 = smov %s1953_s19 }
 0x282   : > { %s2814_s22 = sld [smem:[#allocation18_spill]]  ;;  %24 = sbr.rel (!%p22_p1) target bundleno = 13 (0xd), region = 113 }
 0x285   : > { %s2816_s19 = smov %s2811_s3 }
 0x287   :  { %1158 = vsyncpa [#allocation3], 1 }
 0x288   :  { %1160 = vsyncpa [#allocation3 + $0x1], 1 }
 0x289   :  { %1161 = vsyncpa [#allocation6], 1 }
 0x28a   :  { %1163 = vsyncpa [#allocation6 + $0x1], 1 }
 0x28b   :  { %1164 = vsyncpa [#allocation9], 1 }
 0x28c   :  { %1165 = vsyncpa [#allocation4], 1 }
 0x28d   :  { %1167 = vsyncpa [#allocation4 + $0x1], 1 }

</bundles_post_ra>
